<compile_context>
chip_gen: v5e
topology: v5e:2x2
jax: 0.10.0
libtpu: 0.0.40
codegen_flags: <defaults>
</compile_context>

<pallas_src>
import jax
import jax.numpy as jnp
from jax import lax
from jax.experimental import pallas as pl
from jax.experimental.pallas import tpu as pltpu

HIDDEN_1 = 100
HIDDEN_2 = 30
OP_DIM = 17
INPUT_DIM = 21
BN_EPS = 1e-5
SUBLANE = 8

_VMEM_LIMIT = 48 * 1024 * 1024  # > 32 MiB scoped default, < v7x 64 MiB physical

_SMEM_SPEC = pl.BlockSpec(memory_space=pltpu.MemorySpace.SMEM)
_VMEM_SPEC = pl.BlockSpec(memory_space=pltpu.MemorySpace.VMEM)


def _full_spec(*shape):
    """Whole-array block pinned at block index (0,...,0): stays VMEM-resident."""
    return pl.BlockSpec(shape, lambda *_: (0,) * len(shape))


def _round_up(n, m):
    return ((n + m - 1) // m) * m


def _bn_scale_shift(s, sq, inv_n, gamma, beta):
    """Training-mode BatchNorm folded into one scale+shift from sum / sumsq."""
    mean = s * inv_n
    var = jnp.maximum(sq * inv_n - mean * mean, 0.0)
    scale = gamma * lax.rsqrt(var + BN_EPS)
    shift = beta - mean * scale
    return scale, shift


# ----------------------------------------------------------------------------
# Fused single-call kernel (small batches).
# ----------------------------------------------------------------------------
def _fused_kernel(n_ref, x_ref, w1_ref, g1_ref, be1_ref,
                  w2_ref, g2_ref, be2_ref, w3_ref, b3_ref,
                  out2_ref, out_ref):
    n = n_ref[0]
    inv_n = 1.0 / n.astype(jnp.float32)

    # fc1 (bias folded into BN) + bn1 + relu.  Padded x rows are zero and fc1
    # carries no bias here, so they contribute exactly 0 to sum / sumsq.
    h1 = jnp.dot(x_ref[...], w1_ref[...], preferred_element_type=jnp.float32)
    s1, t1 = _bn_scale_shift(jnp.sum(h1, axis=0, keepdims=True),
                             jnp.sum(h1 * h1, axis=0, keepdims=True),
                             inv_n, g1_ref[...], be1_ref[...])
    a1 = jnp.maximum(h1 * s1 + t1, 0.0)

    # fc2 + bn2 + relu.  Padded rows are nonzero after the bn1 shift, so mask
    # them out of bn2's statistics with an in-kernel iota row mask.
    h2 = jnp.dot(a1.astype(jnp.bfloat16), w2_ref[...],
                 preferred_element_type=jnp.float32)
    rows = lax.broadcasted_iota(jnp.int32, (h2.shape[0], 1), 0)
    h2m = h2 * (rows < n).astype(jnp.float32)
    s2, t2 = _bn_scale_shift(jnp.sum(h2m, axis=0, keepdims=True),
                             jnp.sum(h2m * h2m, axis=0, keepdims=True),
                             inv_n, g2_ref[...], be2_ref[...])
    a2 = jnp.maximum(h2 * s2 + t2, 0.0)

    # fc3 + sigmoid.
    h3 = jnp.dot(a2.astype(jnp.bfloat16), w3_ref[...],
                 preferred_element_type=jnp.float32) + b3_ref[...]
    out2_ref[...] = jax.nn.sigmoid(h3)
    out_ref[...] = a2


# ----------------------------------------------------------------------------
# Tiled three-pass kernels (large batches).
# ----------------------------------------------------------------------------
def _bn1_stats_kernel(n_ref, x_ref, w1_ref, g1_ref, be1_ref,
                      scale1_ref, shift1_ref, sum_acc, sq_acc):
    t = pl.program_id(0)

    @pl.when(t == 0)
    def _():
        sum_acc[...] = jnp.zeros_like(sum_acc)
        sq_acc[...] = jnp.zeros_like(sq_acc)

    h1 = jnp.dot(x_ref[...], w1_ref[...], preferred_element_type=jnp.float32)
    sum_acc[...] += jnp.sum(h1, axis=0, keepdims=True)
    sq_acc[...] += jnp.sum(h1 * h1, axis=0, keepdims=True)

    @pl.when(t == pl.num_programs(0) - 1)
    def _():
        inv_n = 1.0 / n_ref[0].astype(jnp.float32)
        s, sh = _bn_scale_shift(sum_acc[...], sq_acc[...], inv_n,
                                g1_ref[...], be1_ref[...])
        scale1_ref[...] = s
        shift1_ref[...] = sh


def _bn2_stats_kernel(n_ref, x_ref, w1_ref, scale1_ref, shift1_ref,
                      w2_ref, g2_ref, be2_ref,
                      scale2_ref, shift2_ref, sum_acc, sq_acc):
    t = pl.program_id(0)
    tm = x_ref.shape[0]

    @pl.when(t == 0)
    def _():
        sum_acc[...] = jnp.zeros_like(sum_acc)
        sq_acc[...] = jnp.zeros_like(sq_acc)

    h1 = jnp.dot(x_ref[...], w1_ref[...], preferred_element_type=jnp.float32)
    a1 = jnp.maximum(h1 * scale1_ref[...] + shift1_ref[...], 0.0)
    h2 = jnp.dot(a1.astype(jnp.bfloat16), w2_ref[...],
                 preferred_element_type=jnp.float32)

    rows = t * tm + lax.broadcasted_iota(jnp.int32, (tm, 1), 0)
    h2m = h2 * (rows < n_ref[0]).astype(jnp.float32)
    sum_acc[...] += jnp.sum(h2m, axis=0, keepdims=True)
    sq_acc[...] += jnp.sum(h2m * h2m, axis=0, keepdims=True)

    @pl.when(t == pl.num_programs(0) - 1)
    def _():
        inv_n = 1.0 / n_ref[0].astype(jnp.float32)
        s, sh = _bn_scale_shift(sum_acc[...], sq_acc[...], inv_n,
                                g2_ref[...], be2_ref[...])
        scale2_ref[...] = s
        shift2_ref[...] = sh


def _final_kernel(x_ref, w1_ref, scale1_ref, shift1_ref,
                  w2_ref, scale2_ref, shift2_ref, w3_ref, b3_ref,
                  out2_ref, out_ref):
    h1 = jnp.dot(x_ref[...], w1_ref[...], preferred_element_type=jnp.float32)
    a1 = jnp.maximum(h1 * scale1_ref[...] + shift1_ref[...], 0.0)
    h2 = jnp.dot(a1.astype(jnp.bfloat16), w2_ref[...],
                 preferred_element_type=jnp.float32)
    a2 = jnp.maximum(h2 * scale2_ref[...] + shift2_ref[...], 0.0)
    h3 = jnp.dot(a2.astype(jnp.bfloat16), w3_ref[...],
                 preferred_element_type=jnp.float32) + b3_ref[...]
    out2_ref[...] = jax.nn.sigmoid(h3)
    out_ref[...] = a2


# ----------------------------------------------------------------------------
# Wrappers.
# ----------------------------------------------------------------------------
def _forward_fused(x_bf, n_arr, w1b, g1, be1, w2b, g2, be2, w3b, b3, b_pad):
    return pl.pallas_call(
        _fused_kernel,
        out_shape=(jax.ShapeDtypeStruct((b_pad, OP_DIM), jnp.float32),
                   jax.ShapeDtypeStruct((b_pad, HIDDEN_2), jnp.float32)),
        in_specs=[_SMEM_SPEC] + [_VMEM_SPEC] * 9,
        out_specs=(_VMEM_SPEC, _VMEM_SPEC),
        compiler_params=pltpu.CompilerParams(vmem_limit_bytes=_VMEM_LIMIT),
    )(n_arr, x_bf, w1b, g1, be1, w2b, g2, be2, w3b, b3)


def _forward_tiled(x_bf, n_arr, w1b, g1, be1, w2b, g2, be2, w3b, b3,
                   b_pad, tm):
    nt = b_pad // tm
    red_params = pltpu.CompilerParams(dimension_semantics=("arbitrary",),
                                      vmem_limit_bytes=_VMEM_LIMIT)
    par_params = pltpu.CompilerParams(dimension_semantics=("parallel",),
                                      vmem_limit_bytes=_VMEM_LIMIT)
    x_spec = pl.BlockSpec((tm, INPUT_DIM), lambda t: (t, 0))
    vec1 = _full_spec(1, HIDDEN_1)
    vec2 = _full_spec(1, HIDDEN_2)

    # Pass 1: bn1 batch statistics -> (scale1, shift1).
    scale1, shift1 = pl.pallas_call(
        _bn1_stats_kernel,
        grid=(nt,),
        out_shape=(jax.ShapeDtypeStruct((1, HIDDEN_1), jnp.float32),
                   jax.ShapeDtypeStruct((1, HIDDEN_1), jnp.float32)),
        in_specs=[_SMEM_SPEC, x_spec,
                  _full_spec(INPUT_DIM, HIDDEN_1), vec1, vec1],
        out_specs=(vec1, vec1),
        scratch_shapes=[pltpu.VMEM((1, HIDDEN_1), jnp.float32),
                        pltpu.VMEM((1, HIDDEN_1), jnp.float32)],
        compiler_params=red_params,
    )(n_arr, x_bf, w1b, g1, be1)

    # Pass 2: bn2 batch statistics -> (scale2, shift2).
    scale2, shift2 = pl.pallas_call(
        _bn2_stats_kernel,
        grid=(nt,),
        out_shape=(jax.ShapeDtypeStruct((1, HIDDEN_2), jnp.float32),
                   jax.ShapeDtypeStruct((1, HIDDEN_2), jnp.float32)),
        in_specs=[_SMEM_SPEC, x_spec,
                  _full_spec(INPUT_DIM, HIDDEN_1), vec1, vec1,
                  _full_spec(HIDDEN_1, HIDDEN_2), vec2, vec2],
        out_specs=(vec2, vec2),
        scratch_shapes=[pltpu.VMEM((1, HIDDEN_2), jnp.float32),
                        pltpu.VMEM((1, HIDDEN_2), jnp.float32)],
        compiler_params=red_params,
    )(n_arr, x_bf, w1b, scale1, shift1, w2b, g2, be2)

    # Pass 3: normalize + fc3 + sigmoid, fully parallel over batch tiles.
    out2, out = pl.pallas_call(
        _final_kernel,
        grid=(nt,),
        out_shape=(jax.ShapeDtypeStruct((b_pad, OP_DIM), jnp.float32),
                   jax.ShapeDtypeStruct((b_pad, HIDDEN_2), jnp.float32)),
        in_specs=[x_spec,
                  _full_spec(INPUT_DIM, HIDDEN_1), vec1, vec1,
                  _full_spec(HIDDEN_1, HIDDEN_2), vec2, vec2,
                  _full_spec(HIDDEN_2, OP_DIM), _full_spec(1, OP_DIM)],
        out_specs=(pl.BlockSpec((tm, OP_DIM), lambda t: (t, 0)),
                   pl.BlockSpec((tm, HIDDEN_2), lambda t: (t, 0))),
        compiler_params=par_params,
    )(x_bf, w1b, scale1, shift1, w2b, scale2, shift2, w3b, b3)
    return out2, out


def fcnet_new_forward(x, params, *, tile_rows=2048, fused_max_rows=1024):
    """FCNet_new forward (training-mode BatchNorm). Returns (output2, output).

    tile_rows ~2048 is sized for v7x's 64 MiB VMEM; v5e/v6e can go larger.
    """
    w1, b1, g1, be1, w2, b2, g2, be2, w3, b3 = params
    # b1/b2 are exactly cancelled by the batch-mean subtraction of the
    # training-mode BatchNorm that follows fc1/fc2, so they never enter the
    # kernels.  NOTE: exact bn1 statistics also rely on x being zero-padded
    # (zero rows contribute exactly 0 to sum / sumsq with no fc1 bias).
    del b1, b2

    B = x.shape[0]
    n_arr = jnp.full((1,), B, dtype=jnp.int32)

    # bf16 MXU operands; accumulation and BN/activation math stay f32.
    x_bf = x.astype(jnp.bfloat16)
    w1b = w1.astype(jnp.bfloat16)
    w2b = w2.astype(jnp.bfloat16)
    w3b = w3.astype(jnp.bfloat16)

    if _round_up(B, SUBLANE) <= max(fused_max_rows, 0):
        # Small batch: single fused call (call overhead dominates anyway).
        b_pad = _round_up(B, SUBLANE)
        if b_pad != B:
            x_bf = jnp.pad(x_bf, ((0, b_pad - B), (0, 0)))
        out2, out = _forward_fused(x_bf, n_arr, w1b, g1, be1,
                                   w2b, g2, be2, w3b, b3, b_pad)
    else:
        # Large batch: batch-tiled, pipelined three-pass path.
        tm = max(_round_up(tile_rows, 16), 16)     # bf16 sublane-pack multiple
        b_pad = _round_up(B, tm)
        if b_pad != B:
            x_bf = jnp.pad(x_bf, ((0, b_pad - B), (0, 0)))
        out2, out = _forward_tiled(x_bf, n_arr, w1b, g1, be1,
                                   w2b, g2, be2, w3b, b3, b_pad, tm)

    if b_pad != B:
        out2 = out2[:B]
        out = out[:B]
    return out2, out


def init_params(key):
    """nn.Linear / nn.BatchNorm1d-shaped params; Linear weights pre-transposed
    to [in, out], 1-D params reshaped to [1, N] for lane broadcast."""
    ks = jax.random.split(key, 6)

    def linear(kw, kb, fan_in, fan_out):
        bound = 1.0 / jnp.sqrt(fan_in)
        w = jax.random.uniform(kw, (fan_in, fan_out), jnp.float32, -bound, bound)
        b = jax.random.uniform(kb, (1, fan_out), jnp.float32, -bound, bound)
        return w, b

    w1, b1 = linear(ks[0], ks[1], INPUT_DIM, HIDDEN_1)
    w2, b2 = linear(ks[2], ks[3], HIDDEN_1, HIDDEN_2)
    w3, b3 = linear(ks[4], ks[5], HIDDEN_2, OP_DIM)

    g1 = jnp.ones((1, HIDDEN_1), jnp.float32)
    be1 = jnp.zeros((1, HIDDEN_1), jnp.float32)
    g2 = jnp.ones((1, HIDDEN_2), jnp.float32)
    be2 = jnp.zeros((1, HIDDEN_2), jnp.float32)

    return (w1, b1, g1, be1, w2, b2, g2, be2, w3, b3)


def reference_forward(x, params):
    """Pure-JAX reference (training-mode BN, biases included), mirroring the
    kernels' bf16 matmul operands."""
    w1, b1, g1, be1, w2, b2, g2, be2, w3, b3 = params

    def mm(a, w):
        return jnp.dot(a.astype(jnp.bfloat16), w.astype(jnp.bfloat16),
                       preferred_element_type=jnp.float32)

    def bn(h, gamma, beta):
        mean = jnp.mean(h, axis=0, keepdims=True)
        var = jnp.mean(jnp.square(h - mean), axis=0, keepdims=True)
        return (h - mean) * lax.rsqrt(var + BN_EPS) * gamma + beta

    a1 = jnp.maximum(bn(mm(x, w1) + b1, g1, be1), 0.0)
    a2 = jnp.maximum(bn(mm(a1, w2) + b2, g2, be2), 0.0)
    h3 = mm(a2, w3) + b3
    return jax.nn.sigmoid(h3), a2


if __name__ == "__main__":
    key = jax.random.PRNGKey(0)
    k_params, k_x1, k_x2, k_x3 = jax.random.split(key, 4)
    params = init_params(k_params)

    fwd = jax.jit(fcnet_new_forward,
                  static_argnames=("tile_rows", "fused_max_rows"))

    def check(x, out2, out, tol=3e-3):
        r2, r = reference_forward(x, params)
        assert out2.shape == r2.shape and out.shape == r.shape
        assert bool(jnp.all(jnp.isfinite(out2))) and bool(jnp.all(jnp.isfinite(out)))
        assert bool(jnp.all((out2 >= 0.0) & (out2 <= 1.0)))
        assert bool(jnp.all(out >= 0.0))
        assert bool(jnp.allclose(out2, r2, atol=tol, rtol=tol)), \
            float(jnp.max(jnp.abs(out2 - r2)))
        assert bool(jnp.allclose(out, r, atol=tol, rtol=tol)), \
            float(jnp.max(jnp.abs(out - r)))

    # 1) Small aligned batch -> single fused pallas_call.
    x_small = jax.random.normal(k_x1, (8, INPUT_DIM), jnp.float32)
    o2, o = fwd(x_small, params)
    jax.block_until_ready((o2, o))
    check(x_small, o2, o)

    # 2) Non-multiple-of-8 batch -> fused path, in-kernel iota row mask active.
    x_odd = jax.random.normal(k_x2, (5, INPUT_DIM), jnp.float32)
    o2_odd, o_odd = fwd(x_odd, params)
    jax.block_until_ready((o2_odd, o_odd))
    check(x_odd, o2_odd, o_odd)

    # 3) Force the batch-tiled three-pass path (small tile so the test stays
    #    small; the last tile is partially masked).
    x_big = jax.random.normal(k_x3, (200, INPUT_DIM), jnp.float32)
    o2_big, o_big = fwd(x_big, params, tile_rows=64, fused_max_rows=0)
    jax.block_until_ready((o2_big, o_big))
    check(x_big, o2_big, o_big)

    print("KERNEL_OK")
</pallas_src>

<mosaic_0001>
module attributes {stable_mosaic.version = 11 : i64} {
  func.func @_fused_kernel(%arg0: memref<1xi32, #tpu.memory_space<smem>>, %arg1: memref<8x21xbf16, #tpu.memory_space<vmem>>, %arg2: memref<21x100xbf16, #tpu.memory_space<vmem>>, %arg3: memref<1x100xf32, #tpu.memory_space<vmem>>, %arg4: memref<1x100xf32, #tpu.memory_space<vmem>>, %arg5: memref<100x30xbf16, #tpu.memory_space<vmem>>, %arg6: memref<1x30xf32, #tpu.memory_space<vmem>>, %arg7: memref<1x30xf32, #tpu.memory_space<vmem>>, %arg8: memref<30x17xbf16, #tpu.memory_space<vmem>>, %arg9: memref<1x17xf32, #tpu.memory_space<vmem>>, %arg10: memref<8x17xf32, #tpu.memory_space<vmem>>, %arg11: memref<8x30xf32, #tpu.memory_space<vmem>>) attributes {dimension_semantics = [], scalar_prefetch = 0 : i64, scratch_operands = 0 : i64, tpu.core_type = #tpu.core_type<tc>} {
    %c0 = arith.constant 0 : index
    %0 = memref.load %arg0[%c0] : memref<1xi32, #tpu.memory_space<smem>>
    %1 = arith.sitofp %0 : i32 to f32
    %cst = arith.constant 1.000000e+00 : f32
    %2 = arith.divf %cst, %1 : f32
    %c0_0 = arith.constant 0 : index
    %c0_1 = arith.constant 0 : index
    %3 = vector.load %arg1[%c0_0, %c0_1] : memref<8x21xbf16, #tpu.memory_space<vmem>>, vector<8x21xbf16>
    %c0_2 = arith.constant 0 : index
    %c0_3 = arith.constant 0 : index
    %4 = vector.load %arg2[%c0_2, %c0_3] : memref<21x100xbf16, #tpu.memory_space<vmem>>, vector<21x100xbf16>
    %cst_4 = arith.constant dense<0.000000e+00> : vector<8x100xf32>
    %5 = tpu.matmul %3, %4, %cst_4 {dimension_numbers = #tpu.dot_dimension_numbers<[1], [0], [0], [1], [0, 0, 1, 1], [], []>} : vector<8x21xbf16>, vector<21x100xbf16>, vector<8x100xf32> -> vector<8x100xf32>
    %cst_5 = arith.constant dense<0.000000e+00> : vector<100xf32>
    %6 = vector.multi_reduction <add>, %5, %cst_5 [0] : vector<8x100xf32> to vector<100xf32>
    %7 = vector.shape_cast %6 : vector<100xf32> to vector<1x100xf32>
    %8 = arith.mulf %5, %5 : vector<8x100xf32>
    %cst_6 = arith.constant dense<0.000000e+00> : vector<100xf32>
    %9 = vector.multi_reduction <add>, %8, %cst_6 [0] : vector<8x100xf32> to vector<100xf32>
    %10 = vector.shape_cast %9 : vector<100xf32> to vector<1x100xf32>
    %c0_7 = arith.constant 0 : index
    %c0_8 = arith.constant 0 : index
    %11 = vector.load %arg3[%c0_7, %c0_8] : memref<1x100xf32, #tpu.memory_space<vmem>>, vector<1x100xf32>
    %c0_9 = arith.constant 0 : index
    %c0_10 = arith.constant 0 : index
    %12 = vector.load %arg4[%c0_9, %c0_10] : memref<1x100xf32, #tpu.memory_space<vmem>>, vector<1x100xf32>
    %13 = vector.broadcast %2 : f32 to vector<1x100xf32>
    %14 = arith.mulf %7, %13 : vector<1x100xf32>
    %15 = vector.broadcast %2 : f32 to vector<1x100xf32>
    %16 = arith.mulf %10, %15 : vector<1x100xf32>
    %17 = arith.mulf %14, %14 : vector<1x100xf32>
    %18 = arith.subf %16, %17 : vector<1x100xf32>
    %cst_11 = arith.constant 0.000000e+00 : f32
    %19 = vector.broadcast %cst_11 : f32 to vector<1x100xf32>
    %20 = arith.maximumf %18, %19 : vector<1x100xf32>
    %cst_12 = arith.constant 9.99999974E-6 : f32
    %21 = vector.broadcast %cst_12 : f32 to vector<1x100xf32>
    %22 = arith.addf %20, %21 : vector<1x100xf32>
    %23 = math.rsqrt %22 : vector<1x100xf32>
    %24 = arith.mulf %11, %23 : vector<1x100xf32>
    %25 = arith.mulf %14, %24 : vector<1x100xf32>
    %26 = arith.subf %12, %25 : vector<1x100xf32>
    %27 = vector.broadcast %24 : vector<1x100xf32> to vector<8x100xf32>
    %28 = arith.mulf %5, %27 : vector<8x100xf32>
    %29 = vector.broadcast %26 : vector<1x100xf32> to vector<8x100xf32>
    %30 = arith.addf %28, %29 : vector<8x100xf32>
    %cst_13 = arith.constant 0.000000e+00 : f32
    %31 = vector.broadcast %cst_13 : f32 to vector<8x100xf32>
    %32 = arith.maximumf %30, %31 : vector<8x100xf32>
    %33 = arith.truncf %32 : vector<8x100xf32> to vector<8x100xbf16>
    %c0_14 = arith.constant 0 : index
    %c0_15 = arith.constant 0 : index
    %34 = vector.load %arg5[%c0_14, %c0_15] : memref<100x30xbf16, #tpu.memory_space<vmem>>, vector<100x30xbf16>
    %cst_16 = arith.constant dense<0.000000e+00> : vector<8x30xf32>
    %35 = tpu.matmul %33, %34, %cst_16 {dimension_numbers = #tpu.dot_dimension_numbers<[1], [0], [0], [1], [0, 0, 1, 1], [], []>} : vector<8x100xbf16>, vector<100x30xbf16>, vector<8x30xf32> -> vector<8x30xf32>
    %36 = tpu.iota {dimensions = array<i32: 0>} : vector<8x1xi32>
    %37 = vector.broadcast %0 : i32 to vector<8x1xi32>
    %38 = arith.cmpi slt, %36, %37 : vector<8x1xi32>
    %39 = arith.extui %38 : vector<8x1xi1> to vector<8x1xi32>
    %40 = arith.sitofp %39 : vector<8x1xi32> to vector<8x1xf32>
    %41 = vector.broadcast %40 : vector<8x1xf32> to vector<8x30xf32>
    %42 = arith.mulf %35, %41 : vector<8x30xf32>
    %cst_17 = arith.constant dense<0.000000e+00> : vector<30xf32>
    %43 = vector.multi_reduction <add>, %42, %cst_17 [0] : vector<8x30xf32> to vector<30xf32>
    %44 = vector.shape_cast %43 : vector<30xf32> to vector<1x30xf32>
    %45 = arith.mulf %42, %42 : vector<8x30xf32>
    %cst_18 = arith.constant dense<0.000000e+00> : vector<30xf32>
    %46 = vector.multi_reduction <add>, %45, %cst_18 [0] : vector<8x30xf32> to vector<30xf32>
    %47 = vector.shape_cast %46 : vector<30xf32> to vector<1x30xf32>
    %c0_19 = arith.constant 0 : index
    %c0_20 = arith.constant 0 : index
    %48 = vector.load %arg6[%c0_19, %c0_20] : memref<1x30xf32, #tpu.memory_space<vmem>>, vector<1x30xf32>
    %c0_21 = arith.constant 0 : index
    %c0_22 = arith.constant 0 : index
    %49 = vector.load %arg7[%c0_21, %c0_22] : memref<1x30xf32, #tpu.memory_space<vmem>>, vector<1x30xf32>
    %50 = vector.broadcast %2 : f32 to vector<1x30xf32>
    %51 = arith.mulf %44, %50 : vector<1x30xf32>
    %52 = vector.broadcast %2 : f32 to vector<1x30xf32>
    %53 = arith.mulf %47, %52 : vector<1x30xf32>
    %54 = arith.mulf %51, %51 : vector<1x30xf32>
    %55 = arith.subf %53, %54 : vector<1x30xf32>
    %cst_23 = arith.constant 0.000000e+00 : f32
    %56 = vector.broadcast %cst_23 : f32 to vector<1x30xf32>
    %57 = arith.maximumf %55, %56 : vector<1x30xf32>
    %cst_24 = arith.constant 9.99999974E-6 : f32
    %58 = vector.broadcast %cst_24 : f32 to vector<1x30xf32>
    %59 = arith.addf %57, %58 : vector<1x30xf32>
    %60 = math.rsqrt %59 : vector<1x30xf32>
    %61 = arith.mulf %48, %60 : vector<1x30xf32>
    %62 = arith.mulf %51, %61 : vector<1x30xf32>
    %63 = arith.subf %49, %62 : vector<1x30xf32>
    %64 = vector.broadcast %61 : vector<1x30xf32> to vector<8x30xf32>
    %65 = arith.mulf %35, %64 : vector<8x30xf32>
    %66 = vector.broadcast %63 : vector<1x30xf32> to vector<8x30xf32>
    %67 = arith.addf %65, %66 : vector<8x30xf32>
    %cst_25 = arith.constant 0.000000e+00 : f32
    %68 = vector.broadcast %cst_25 : f32 to vector<8x30xf32>
    %69 = arith.maximumf %67, %68 : vector<8x30xf32>
    %70 = arith.truncf %69 : vector<8x30xf32> to vector<8x30xbf16>
    %c0_26 = arith.constant 0 : index
    %c0_27 = arith.constant 0 : index
    %71 = vector.load %arg8[%c0_26, %c0_27] : memref<30x17xbf16, #tpu.memory_space<vmem>>, vector<30x17xbf16>
    %cst_28 = arith.constant dense<0.000000e+00> : vector<8x17xf32>
    %72 = tpu.matmul %70, %71, %cst_28 {dimension_numbers = #tpu.dot_dimension_numbers<[1], [0], [0], [1], [0, 0, 1, 1], [], []>} : vector<8x30xbf16>, vector<30x17xbf16>, vector<8x17xf32> -> vector<8x17xf32>
    %c0_29 = arith.constant 0 : index
    %c0_30 = arith.constant 0 : index
    %73 = vector.load %arg9[%c0_29, %c0_30] : memref<1x17xf32, #tpu.memory_space<vmem>>, vector<1x17xf32>
    %74 = vector.broadcast %73 : vector<1x17xf32> to vector<8x17xf32>
    %75 = arith.addf %72, %74 : vector<8x17xf32>
    %76 = arith.negf %75 : vector<8x17xf32>
    %77 = math.exp %76 : vector<8x17xf32>
    %cst_31 = arith.constant 1.000000e+00 : f32
    %78 = vector.broadcast %cst_31 : f32 to vector<8x17xf32>
    %79 = arith.addf %78, %77 : vector<8x17xf32>
    %80 = arith.divf %78, %79 : vector<8x17xf32>
    %c0_32 = arith.constant 0 : index
    %c0_33 = arith.constant 0 : index
    %81 = vector.load %arg10[%c0_32, %c0_33] : memref<8x17xf32, #tpu.memory_space<vmem>>, vector<8x17xf32>
    tpu.vector_store %arg10[%c0_32, %c0_33], %80 {strides = array<i32>} : memref<8x17xf32, #tpu.memory_space<vmem>>, vector<8x17xf32>,
    %c0_34 = arith.constant 0 : index
    %c0_35 = arith.constant 0 : index
    %82 = vector.load %arg11[%c0_34, %c0_35] : memref<8x30xf32, #tpu.memory_space<vmem>>, vector<8x30xf32>
    tpu.vector_store %arg11[%c0_34, %c0_35], %69 {strides = array<i32>} : memref<8x30xf32, #tpu.memory_space<vmem>>, vector<8x30xf32>,
    return
  }
}

</mosaic_0001>

<bundles_post_ra>
// kernel: fcnet_new_forward.1
= control target key start
LH: loop header
LB: loop body
LE: loop exit
PB: predicated region body
PF: predicated region fallthrough
CT: control target
= control target key end

     0   :  { %18 = vsyncpa [#allocation4], 0  ;;  %vm76_vm0 = vcmask 1041408   ;;  %vm77_vm1 = vcmask 1042432   ;;  %v481_v2 = vmov 65535   ;;  %s626_s0 = inlined_call_operand.<no memory space> [shape: s32[1], index: 0, kind: input, shape index: {}]   ;;  %s627_s1 = inlined_call_operand.vmem [shape: bf16[8,21], index: 1, kind: input, shape index: {}]   ;;  %s628_s2 = inlined_call_operand.vmem [shape: bf16[21,100], index: 2, kind: input, shape index: {}]   ;;  %s629_s3 = inlined_call_operand.vmem [shape: f32[1,100], index: 3, kind: input, shape index: {}]   ;;  %s630_s4 = inlined_call_operand.vmem [shape: f32[1,100], index: 4, kind: input, shape index: {}]   ;;  %s631_s5 = inlined_call_operand.vmem [shape: bf16[100,30], index: 5, kind: input, shape index: {}]   ;;  %s632_s6 = inlined_call_operand.vmem [shape: f32[1,30], index: 6, kind: input, shape index: {}]   ;;  %s633_s7 = inlined_call_operand.vmem [shape: f32[1,30], index: 7, kind: input, shape index: {}]   ;;  %s634_s8 = inlined_call_operand.vmem [shape: bf16[30,17], index: 8, kind: input, shape index: {}]   ;;  %s635_s9 = inlined_call_operand.vmem [shape: f32[1,17], index: 9, kind: input, shape index: {}]   ;;  %s636_s10 = inlined_call_operand.hbm [shape: f32[8,17], index: 10, kind: output, shape index: {0}]   ;;  %s637_s11 = inlined_call_operand.hbm [shape: f32[8,30], index: 11, kind: output, shape index: {1}]  }
   0x1   :  { %v62_v0 = vld [vmem:[%s628_s2 + $0x8] sm:$0x7]  ;;  %s42_s21 = scvt.s32.f32 %s626_s0  ;;  %v78_v3 = vsel %vm76_vm0, 4294967295, %v481_v2 }
   0x2   :  { %v68_v1 = vunpack.c.l.b16 %v62_v0  ;;  %v79_v4 = vsel %vm77_vm1, %v78_v3, 0 }
   0x3   :  { %v43_v5 = vstv %s42_s21 }
   0x4   :  { %19 = vsyncpa [#allocation6], 0  ;;  %v70_v6 = vpack.c.b16 %v68_v1, %v68_v1  ;;  %419 = vrcp.f32 %v43_v5  ;;  %v403_v8 = vld [vmem:[%s628_s2] sm:$0xff]  ;;  %vm72_vm2 = vcmask 171008   ;;  %v55_v12 = vand.u32 2147483648, %v43_v5  ;;  %v409_v24 = vld [vmem:[%s631_s5 + $0x28] sm:$0xff] }
   0x5   :  { %v59_v11 = vld [vmem:[%s627_s1] sm:$0xf]  ;;  %vm49_vm3 = vweird.f32 %v43_v5  ;;  %v53_v14 = vand.u32 2147483647, %v43_v5  ;;  %v156_v20 = vld [vmem:[%s631_s5 + $0x30] sm:$0x3] }
   0x6   :  { %v81_v7 = vand.u32 %v79_v4, %v70_v6  ;;  %v56_v16 = vor.u32 1.1754944e-38, %v55_v12  ;;  %v182_v21 = vunpack.c.l.b16 %v156_v20  ;;  %v408_v25 = vld [vmem:[%s631_s5 + $0x20] sm:$0xff]  ;;  %v407_v26 = vld [vmem:[%s631_s5 + $0x18] sm:$0xff]  ;;  %v406_v27 = vld [vmem:[%s631_s5 + $0x10] sm:$0xff]  ;;  %vm96_vm7 = vcmask 818176   ;;  %s348_s13 = sshll.u32 %s637_s11, 4  ;;  %s349_s13 = int_to_ptr.hbm [resolvable:$true] %s348_s13 }
   0x7   :  { %vm54_vm6 = vcmp.eq.f32.partialorder %v53_v14, 8.507059e+37  ;;  %v405_v28 = vld [vmem:[%s631_s5 + $0x8] sm:$0xff]  ;;  %v404_v32 = vld [vmem:[%s631_s5] sm:$0xff]  ;;  %vm222_vm12 = vcmask 244736   ;;  %vm291_vm13 = vcmask 1046528   ;;  %s484_s11 = smov [#allocation3]  }
   0x8   :  { %89 = vmatpush.bf16.msra.mxu0 %v81_v7  ;;  %v189_v22 = vpack.c.b16 %v182_v21, %v182_v21  ;;  %v112_v59 = vld [vmem:[%s629_s3] sm:$0x1]  ;;  %s335_s15 = sshll.u32 %s484_s11, 4  ;;  %s336_s15 = int_to_ptr.vmem [resolvable:$true] %s335_s15 }
   0x9   :  { %v113_v63 = vld [vmem:[%s630_s4] sm:$0x1] }
   0xa   :  { %v420_v9 = vpop.eup %419  ;;  %v200_v23 = vsel %vm76_vm0, %v189_v22, 0 }
   0xb   :  { %v45_v10 = vmul.f32 %v420_v9, %v43_v5  ;;  %vm50_vm4 = vweird.f32 %v420_v9  ;;  %203 = vmatpush.bf16.msra.mxu1 %v200_v23 }
   0xc   :  { %90 = vmatpush.bf16.msra.mxu0 %v403_v8  ;;  %vm51_vm5 = vmor %vm49_vm3, %vm50_vm4  ;;  %v215_v8 = vlaneseq  ;;  %vm327_vm4 = vcmask 138240  }
   0xd   :  { %v46_v13 = vsub.f32 1.0, %v45_v10  ;;  %v217_v10 = vstv %s626_s0 }
   0xf   :  { %366 = vmatmul.msk.bf16.vlgmr.msra.gmra.mxu0 %vm72_vm2, %v59_v11  ;;  %v47_v15 = vmul.f32 %v420_v9, %v46_v13  ;;  %204 = vmatpush.bf16.msra.mxu1 %v409_v24  ;;  %v482_v11 = vmov 0.0  }
  0x11   :  { %v48_v17 = vadd.f32 %v420_v9, %v47_v15 }
  0x13   :  { %v52_v18 = vsel %vm51_vm5, %v420_v9, %v48_v17  ;;  %205 = vmatpush.bf16.msra.mxu1 %v408_v25  ;;  %v216_v9 = vshrl.u32 %v215_v8, 7 }
  0x14   :  { %v57_v19 = vsel %vm54_vm6, %v56_v16, %v52_v18 }
  0x15   :  { %412 = vpush %v57_v19  ;;  %vm218_vm11 = vcmp.lt.s32.totalorder %v216_v9, %v217_v10 }
  0x16   :  { %v392_v12 = vsel %vm218_vm11, 1.0, %v482_v11 }
  0x17   :  { %206 = vmatpush.bf16.msra.mxu1 %v407_v26 }
  0x1b   :  { %207 = vmatpush.bf16.msra.mxu1 %v406_v27 }
  0x1f   :  { %208 = vmatpush.bf16.msra.mxu1 %v405_v28 }
  0x23   :  { %209 = vmatpush.bf16.msra.mxu1 %v404_v32 }
  0x46   :  { %s413_s19 = spop %412 }
  0x47   :  { %v582_v44 = vstv %s413_s19 }
  0x8c   :  { %v92_v29 = vpop.f32.mrf.mxu0 }
  0x8d   :  { %v104_v30 = vmul.f32 %v92_v29, %v92_v29  ;;  %v97_v31 = vsel %vm96_vm7, %v92_v29, 0.0 }
  0x8e   :  { %v98_v33 = vrot.slane %v97_v31, 4 }
  0x8f   :  { %v105_v34 = vsel %vm96_vm7, %v104_v30, 0.0  ;;  %v399_v30 = vld [vmem:[%s634_s8 + $0x8] sm:$0xf] }
  0x90   :  { %v99_v35 = vadd.f32 %v98_v33, %v97_v31  ;;  %v106_v36 = vrot.slane %v105_v34, 4  ;;  %v411_v31 = vld [vmem:[%s634_s8 + $0x8] sm:$0x70] }
  0x92   :  { %v100_v37 = vrot.slane %v99_v35, 2  ;;  %v107_v38 = vadd.f32 %v106_v36, %v105_v34  ;;  %v400_v34 = vor.u32 %v411_v31, %v399_v30 }
  0x94   :  { %v94_v39 = vpop.f32.mrf.mxu0  ;;  %v101_v40 = vadd.f32 %v100_v37, %v99_v35  ;;  %v108_v41 = vrot.slane %v107_v38, 2  ;;  %v293_v37 = vsel %vm291_vm13, %v400_v34, 0 }
  0x95   :  { %301 = vmatpush.bf16.msra.mxu2 %v293_v37  ;;  %v410_v39 = vld [vmem:[%s634_s8] sm:$0xff] }
  0x96   :  { %v102_v42 = vrot.slane %v101_v40, 1  ;;  %v109_v43 = vadd.f32 %v108_v41, %v107_v38 }
  0x98   :  { %v103_v45 = vadd.f32 %v102_v42, %v101_v40  ;;  %v110_v46 = vrot.slane %v109_v43, 1 }
  0x99   :  { %302 = vmatpush.bf16.msra.mxu2 %v410_v39 }
  0x9a   :  { %v111_v47 = vadd.f32 %v110_v46, %v109_v43  ;;  %v115_v48 = vmul.f32 %v582_v44, %v103_v45 }
  0x9c   :  { %v116_v49 = vmul.f32 %v582_v44, %v111_v47  ;;  %v117_v50 = vmul.f32 %v115_v48, %v115_v48 }
  0x9e   :  { %v118_v51 = vsub.f32 %v116_v49, %v117_v50 }
  0xa0   :  { %v119_v52 = vmax.f32 %v118_v51, 0.0  ;;  %v239_v51 = vld [vmem:[%s633_s7] sm:$0x1] }
  0xa2   :  { %v120_v53 = vadd.f32 1e-05, %v119_v52 }
  0xa4   :  { %421 = vrsqrt.f32 %v120_v53  ;;  %vm127_vm9 = vweird.f32 %v120_v53 }
  0xaa   :  { %v422_v54 = vpop.eup %421 }
  0xab   :  { %v122_v55 = vmul.f32 %v422_v54, %v120_v53  ;;  %vm128_vm8 = vweird.f32 %v422_v54 }
  0xac   :  { %vm129_vm10 = vmor %vm127_vm9, %vm128_vm8 }
  0xad   :  { %v123_v56 = vmul.f32 %v422_v54, %v122_v55 }
  0xaf   :  { %v124_v57 = vmul.f32 0.5, %v123_v56 }
  0xb1   :  { %v125_v58 = vsub.f32 1.5, %v124_v57 }
  0xb3   :  { %v126_v60 = vmul.f32 %v422_v54, %v125_v58 }
  0xb5   :  { %v130_v61 = vsel %vm129_vm10, %v422_v54, %v126_v60  ;;  %v418_v60 = vld [vmem:[%s635_s9] ss:$0 sm:$0xff]  ;;  %s337_s9 = sshll.u32 %s636_s10, 4  ;;  %s338_s9 = int_to_ptr.hbm [resolvable:$true] %s337_s9 }
  0xb6   :  { %v131_v62 = vmul.f32 %v130_v61, %v112_v59 }
  0xb8   :  { %v132_v0 = vmul.f32 %v131_v62, %v115_v48  ;;  %v135_v1 = vperm.slane %v131_v62, 0 }
  0xba   :  { %v133_v2 = vsub.f32 %v113_v63, %v132_v0  ;;  %v137_v3 = vmul.f32 %v135_v1, %v92_v29 }
  0xbc   :  { %v139_v4 = vperm.slane %v133_v2, 0 }
  0xbe   :  { %v141_v5 = vadd.f32 %v139_v4, %v137_v3 }
  0xc0   :  { %v142_v6 = vmax.f32 %v141_v5, 0.0 }
  0xc2   :  { %v143_v7 = vpack.c.bf16 %v142_v6, %v142_v6 }
  0xc4   :  { %391 = vmatmul.msk.bf16.vlgmr.msra.gmra.mxu1 %vm96_vm7, %v143_v7 }
 0x141   :  { %v211_v13 = vpop.f32.mrf.mxu1 }
 0x142   :  { %v221_v14 = vmul.f32 %v392_v12, %v211_v13 }
 0x144   :  { %v223_v15 = vsel %vm222_vm12, %v221_v14, 0.0  ;;  %v230_v16 = vmul.f32 %v221_v14, %v221_v14 }
 0x145   :  { %v224_v17 = vrot.slane %v223_v15, 4 }
 0x146   :  { %v231_v18 = vsel %vm222_vm12, %v230_v16, 0.0 }
 0x147   :  { %v225_v19 = vadd.f32 %v224_v17, %v223_v15  ;;  %v232_v20 = vrot.slane %v231_v18, 4 }
 0x149   :  { %v226_v21 = vrot.slane %v225_v19, 2  ;;  %v233_v22 = vadd.f32 %v232_v20, %v231_v18  ;;  %v213_v23 = vpop.f32.mrf.mxu1 }
 0x14b   :  { %v227_v24 = vadd.f32 %v226_v21, %v225_v19  ;;  %v234_v25 = vrot.slane %v233_v22, 2 }
 0x14d   :  { %v228_v26 = vrot.slane %v227_v24, 1  ;;  %v235_v27 = vadd.f32 %v234_v25, %v233_v22 }
 0x14f   :  { %v229_v28 = vadd.f32 %v228_v26, %v227_v24  ;;  %v236_v29 = vrot.slane %v235_v27, 1 }
 0x151   :  { %v237_v32 = vadd.f32 %v236_v29, %v235_v27  ;;  %v240_v33 = vmul.f32 %v229_v28, %v582_v44 }
 0x153   :  { %v241_v35 = vmul.f32 %v237_v32, %v582_v44  ;;  %v242_v36 = vmul.f32 %v240_v33, %v240_v33  ;;  %v238_v44 = vld [vmem:[%s632_s6] sm:$0x1]  ;;  %s483_s6 = smov [#allocation5]  }
 0x154   :  { %s346_s29 = sshll.u32 %s483_s6, 4  ;;  %s347_s29 = int_to_ptr.vmem [resolvable:$true] %s346_s29 }
 0x155   :  { %v243_v38 = vsub.f32 %v241_v35, %v242_v36 }
 0x157   :  { %v244_v40 = vmax.f32 %v243_v38, 0.0 }
 0x159   :  { %v245_v41 = vadd.f32 1e-05, %v244_v40 }
 0x15b   :  { %423 = vrsqrt.f32 %v245_v41  ;;  %vm252_vm15 = vweird.f32 %v245_v41 }
 0x161   :  { %v424_v42 = vpop.eup %423 }
 0x162   :  { %v247_v43 = vmul.f32 %v424_v42, %v245_v41  ;;  %vm253_vm14 = vweird.f32 %v424_v42 }
 0x163   :  { %vm254_vm0 = vmor %vm252_vm15, %vm253_vm14 }
 0x164   :  { %v248_v45 = vmul.f32 %v424_v42, %v247_v43 }
 0x166   :  { %v249_v46 = vmul.f32 0.5, %v248_v45 }
 0x168   :  { %v250_v47 = vsub.f32 1.5, %v249_v46 }
 0x16a   :  { %v251_v48 = vmul.f32 %v424_v42, %v250_v47 }
 0x16c   :  { %v255_v49 = vsel %vm254_vm0, %v424_v42, %v251_v48 }
 0x16d   :  { %v256_v50 = vmul.f32 %v255_v49, %v238_v44 }
 0x16f   :  { %v257_v52 = vmul.f32 %v256_v50, %v240_v33  ;;  %v260_v53 = vperm.slane %v256_v50, 0 }
 0x171   :  { %v258_v54 = vsub.f32 %v239_v51, %v257_v52  ;;  %v262_v55 = vmul.f32 %v260_v53, %v211_v13 }
 0x173   :  { %v264_v56 = vperm.slane %v258_v54, 0 }
 0x175   :  { %v266_v57 = vadd.f32 %v264_v56, %v262_v55 }
 0x177   :  { %v267_v58 = vmax.f32 %v266_v57, 0.0 }
 0x179   :  { %329 = vst.msk [vmem:[#allocation5] sm:$0xff] %vm222_vm12, %v267_v58  ;;  %v268_v59 = vpack.c.bf16 %v267_v58, %v267_v58 }
 0x17a   :  { %351 = dma.vmem_to_hbm [thread:$0]  %s347_s29, 128, %s349_s13, [#allocation6]  }
 0x17b   :  { %401 = vmatmul.msk.bf16.vlgmr.msra.gmra.mxu2 %vm222_vm12, %v268_v59 }
 0x1fe   :  { %v304_v61 = vpop.f32.mrf.mxu2 }
 0x1ff   :  { %v305_v62 = vadd.f32 %v418_v60, %v304_v61 }
 0x201   :  { %v402_v63 = vmul.f32 -1.442695, %v305_v62 }
 0x203   :  { %425 = vpow2.f32 %v402_v63 }
 0x206   :  { %v306_v0 = vpop.f32.mrf.mxu2 }
 0x209   :  { %v426_v1 = vpop.eup %425 }
 0x20a   :  { %v311_v2 = vadd.f32 1.0, %v426_v1 }
 0x20c   :  { %427 = vrcp.f32 %v311_v2  ;;  %v323_v6 = vand.u32 2147483648, %v311_v2  ;;  %v321_v8 = vand.u32 2147483647, %v311_v2  ;;  %vm317_vm2 = vweird.f32 %v311_v2 }
 0x20e   :  { %v324_v10 = vor.u32 1.1754944e-38, %v323_v6  ;;  %vm322_vm5 = vcmp.eq.f32.partialorder %v321_v8, 8.507059e+37 }
 0x212   :  { %v428_v3 = vpop.eup %427 }
 0x213   :  { %v313_v4 = vmul.f32 %v428_v3, %v311_v2  ;;  %vm318_vm1 = vweird.f32 %v428_v3 }
 0x214   :  { %vm319_vm3 = vmor %vm317_vm2, %vm318_vm1 }
 0x215   :  { %v314_v5 = vsub.f32 1.0, %v313_v4 }
 0x217   :  { %v315_v7 = vmul.f32 %v428_v3, %v314_v5 }
 0x219   :  { %v316_v9 = vadd.f32 %v428_v3, %v315_v7 }
 0x21b   :  { %v320_v11 = vsel %vm319_vm3, %v428_v3, %v316_v9 }
 0x21c   :  { %v325_v12 = vsel %vm322_vm5, %v324_v10, %v320_v11 }
 0x21d   :  { %328 = vst.msk [vmem:[#allocation3] sm:$0xff] %vm327_vm4, %v325_v12 }
 0x21e   :  { %340 = dma.vmem_to_hbm [thread:$0]  %s336_s15, 128, %s338_s9, [#allocation4]  }
 0x21f   :  { %477 = dma.done.wait [#allocation4], 128  }
 0x220   :  { %478 = vsyncadd [#allocation4], 4294967168 }
 0x221   :  { %479 = dma.done.wait [#allocation6], 128  }
 0x222   :  { %480 = vsyncadd [#allocation6], 4294967168 }
 0x223   :  { %360 = vsyncpa [#allocation4], 1 }
 0x224   :  { %361 = vsyncpa [#allocation6], 1 }

</bundles_post_ra>
